<compile_context>
chip_gen: v6e
topology: v6e:2x2x1
jax: 0.10.0
libtpu: 0.0.40
codegen_flags: <defaults>
</compile_context>

<pallas_src>
import jax
import jax.numpy as jnp
from jax.experimental import pallas as pl
from jax.experimental.pallas import tpu as pltpu

_LANE = 128


def _round_up(x: int, m: int) -> int:
    return ((x + m - 1) // m) * m


def _sublane(dtype) -> int:
    # Sublane packing of the vreg: 8 for f32, 16 for bf16, 32 for int8/fp8.
    return max(8, 32 // dtype.itemsize)


def _cls_head_kernel(x_ref, w1_ref, b1_ref, w2_ref, b2_ref, o_ref):
    """One batch tile of: tanh(x @ W1 + b1) @ W2 + b2.

    x_ref : [TB, H]   CLS-token features
    w1_ref: [H, H]    dense weight, pre-transposed to (in, out)
    b1_ref: [1, H]    dense bias
    w2_ref: [H, Lp]   out_proj weight, (in, out), zero-padded to Lp lanes
    b2_ref: [1, Lp]   out_proj bias, zero-padded to Lp
    o_ref : [TB, Lp]
    """
    x = x_ref[...]
    if x.dtype != w1_ref.dtype:           # trace-time check; no-op when equal
        x = x.astype(w1_ref.dtype)

    # Plain (K-contracting) MXU matmul; accumulate in f32.
    h = jnp.dot(x, w1_ref[...], preferred_element_type=jnp.float32)
    # Bias + tanh in f32; tanh lands on the otherwise-idle EUP slot.
    h = jnp.tanh(h + b1_ref[...].astype(jnp.float32))

    y = jnp.dot(h.astype(w2_ref.dtype), w2_ref[...],
                preferred_element_type=jnp.float32)
    y = y + b2_ref[...].astype(jnp.float32)

    o_ref[...] = y.astype(o_ref.dtype)


def prepare_head_params(w_dense, b_dense, w_out, b_out, *, param_dtype=None):
    """One-time parameter preparation (do at weight-load time, NOT per call).

    * Transposes PyTorch (out, in) weights to (in, out) layout.
    * Zero-pads num_labels to a full 128-lane tile (lane-dense stores).
    * Optionally casts to `param_dtype` (e.g. jnp.bfloat16 to feed the MXU at
      full rate on v5e/v6e/v7x, if the model tolerates it).
    Returns (w1t [H,H], b1 [1,H], w2t [H,Lp], b2 [1,Lp]).
    """
    H = w_dense.shape[0]
    L = w_out.shape[0]
    Lp = _round_up(max(L, _LANE), _LANE)

    w1t = jnp.asarray(w_dense).T                                   # [H, H]
    b1 = jnp.asarray(b_dense).reshape(1, H)
    w2t = jnp.zeros((H, Lp), w_out.dtype).at[:, :L].set(jnp.asarray(w_out).T)
    b2 = jnp.zeros((1, Lp), b_out.dtype).at[0, :L].set(jnp.asarray(b_out))

    if param_dtype is not None:
        w1t, b1, w2t, b2 = (a.astype(param_dtype) for a in (w1t, b1, w2t, b2))
    return w1t, b1, w2t, b2


def roberta_classification_head(features, w1t, b1, w2t, b2, num_labels,
                                *, block_b: int = 512):
    """features: [B, S, H]; (w1t, b1, w2t, b2) from prepare_head_params.
    Returns logits [B, num_labels]. Dropout is identity at inference."""
    B, S, H = features.shape
    Lp = w2t.shape[1]
    out_dtype = features.dtype
    sub = _sublane(features.dtype)

    # Batch tile: multiple of the sublane packing, capped at block_b, and sized
    # so that once B is large the grid has >= 2 steps (lets the 'parallel'
    # batch axis shard across both TensorCores on v7x).
    TB = max(sub, min(block_b, _round_up(pl.cdiv(B, 2), sub)))
    grid = (pl.cdiv(B, TB),)

    # CLS-token extraction folded into the kernel: for a contiguous [B, S, H]
    # array the reshape to [B, S*H] is free, and a (TB, H) block at column 0
    # is exactly features[:, 0, :] — no wrapper-side slice/pad HBM round-trip.
    if H % _LANE == 0:
        x = features.reshape(B, S * H)
    else:
        # Lane constraint needs the block's last dim 128-aligned or full-width;
        # for odd hidden sizes fall back to a tiny XLA slice.
        x = features[:, 0, :]

    x_spec = pl.BlockSpec((TB, H), lambda i: (i, 0))       # streams per tile
    out_spec = pl.BlockSpec((TB, Lp), lambda i: (i, 0))

    # Advisory cost so XLA can overlap this small custom call with neighbors.
    cost = pl.CostEstimate(
        flops=int(2 * B * H * (H + Lp)),
        transcendentals=int(B * H),
        bytes_accessed=int(B * H * features.dtype.itemsize
                           + w1t.nbytes + w2t.nbytes + b1.nbytes + b2.nbytes
                           + B * Lp * features.dtype.itemsize))

    # Scoped-VMEM budget: single-buffered weights + double-buffered x/out tiles
    # + f32 intermediates, with headroom; clamped to v7x's 64 MiB physical.
    est = (w1t.nbytes + w2t.nbytes + b1.nbytes + b2.nbytes
           + 2 * TB * H * x.dtype.itemsize
           + 2 * TB * Lp * features.dtype.itemsize
           + TB * (H + Lp) * 4)
    vmem_limit = int(min(64 * 1024 * 1024, max(16 * 1024 * 1024, 1.5 * est)))

    def run(weight_pipeline_mode):
        def const_spec(shape):
            # Weights/biases: constant block index -> stay VMEM-resident.
            if weight_pipeline_mode is None:
                return pl.BlockSpec(shape, lambda i: (0, 0))
            return pl.BlockSpec(shape, lambda i: (0, 0),
                                pipeline_mode=weight_pipeline_mode)

        return pl.pallas_call(
            _cls_head_kernel,
            out_shape=jax.ShapeDtypeStruct((B, Lp), out_dtype),
            grid=grid,
            in_specs=[
                x_spec,
                const_spec((H, H)),     # W1
                const_spec((1, H)),     # b1
                const_spec((H, Lp)),    # W2
                const_spec((1, Lp)),    # b2
            ],
            out_specs=out_spec,
            compiler_params=pltpu.CompilerParams(
                dimension_semantics=("parallel",),
                vmem_limit_bytes=vmem_limit),
            cost_estimate=cost,
        )(x, w1t, b1, w2t, b2)

    try:
        # Single-buffer the constant-index weight operands (no point
        # double-buffering blocks whose index never changes).
        out = run(pl.Buffered(1))
    except Exception:
        # Fallback for jax versions where pipeline_mode / Buffered(1) is not
        # supported by the TPU pipeline — same kernel, default buffering.
        out = run(None)

    # Strip label-lane padding (padded columns are exactly zero-weighted).
    return out[:, :num_labels]


if __name__ == "__main__":
    # Small synthetic config: batch=2, seq=8, hidden=128, num_labels=3.
    # (hidden=128 exercises the folded CLS-slice path; any H is supported.)
    B, S, H, L = 2, 8, 128, 3

    key = jax.random.PRNGKey(0)
    k_feat, k_w1, k_b1, k_w2, k_b2 = jax.random.split(key, 5)

    features = jax.random.normal(k_feat, (B, S, H), dtype=jnp.float32)
    # Deterministic parameter init (roughly nn.Linear default scale),
    # kept in PyTorch (out, in) layout as the module would store them.
    w_dense = jax.random.normal(k_w1, (H, H), dtype=jnp.float32) / jnp.sqrt(H)
    b_dense = jax.random.normal(k_b1, (H,), dtype=jnp.float32) * 0.01
    w_out = jax.random.normal(k_w2, (L, H), dtype=jnp.float32) / jnp.sqrt(H)
    b_out = jax.random.normal(k_b2, (L,), dtype=jnp.float32) * 0.01

    # One-time weight preparation (transpose + lane padding).
    # TODO(synk): training-mode dropout is not implemented (inference identity).
    w1t, b1, w2t, b2 = prepare_head_params(w_dense, b_dense, w_out, b_out)

    out = roberta_classification_head(features, w1t, b1, w2t, b2, num_labels=L)
    out = jax.block_until_ready(out)

    # Pure-JAX reference (dropout is identity at inference).
    x_ref = features[:, 0, :]
    ref = jnp.tanh(x_ref @ w_dense.T + b_dense) @ w_out.T + b_out
    assert out.shape == (B, L)
    assert jnp.allclose(out, ref, atol=5e-4, rtol=5e-4)

    print("KERNEL_OK")
</pallas_src>

<mosaic_0001>
module attributes {stable_mosaic.version = 11 : i64} {
  func.func @_cls_head_kernel(%arg0: i32, %arg1: memref<8x128xf32, #tpu.memory_space<vmem>>, %arg2: memref<128x128xf32, #tpu.memory_space<vmem>>, %arg3: memref<1x128xf32, #tpu.memory_space<vmem>>, %arg4: memref<128x128xf32, #tpu.memory_space<vmem>>, %arg5: memref<1x128xf32, #tpu.memory_space<vmem>>, %arg6: memref<8x128xf32, #tpu.memory_space<vmem>>) attributes {dimension_semantics = [#tpu.dimension_semantics<parallel>], iteration_bounds = array<i64: 1>, scalar_prefetch = 0 : i64, scratch_operands = 0 : i64, tpu.core_type = #tpu.core_type<tc>, window_params = [{transform_indices = @transform_0, window_bounds = array<i64: 8, 128>}, {pipeline_mode = #tpu.pipeline_mode<synchronous>, transform_indices = @transform_1, window_bounds = array<i64: 128, 128>}, {pipeline_mode = #tpu.pipeline_mode<synchronous>, transform_indices = @transform_2, window_bounds = array<i64: 1, 128>}, {pipeline_mode = #tpu.pipeline_mode<synchronous>, transform_indices = @transform_3, window_bounds = array<i64: 128, 128>}, {pipeline_mode = #tpu.pipeline_mode<synchronous>, transform_indices = @transform_4, window_bounds = array<i64: 1, 128>}, {transform_indices = @transform_5, window_bounds = array<i64: 8, 128>}]} {
    %c0 = arith.constant 0 : index
    %c0_0 = arith.constant 0 : index
    %0 = vector.load %arg1[%c0, %c0_0] : memref<8x128xf32, #tpu.memory_space<vmem>>, vector<8x128xf32>
    %c0_1 = arith.constant 0 : index
    %c0_2 = arith.constant 0 : index
    %1 = vector.load %arg2[%c0_1, %c0_2] : memref<128x128xf32, #tpu.memory_space<vmem>>, vector<128x128xf32>
    %cst = arith.constant dense<0.000000e+00> : vector<8x128xf32>
    %2 = tpu.matmul %0, %1, %cst {dimension_numbers = #tpu.dot_dimension_numbers<[1], [0], [0], [1], [0, 0, 1, 1], [], []>} : vector<8x128xf32>, vector<128x128xf32>, vector<8x128xf32> -> vector<8x128xf32>
    %c0_3 = arith.constant 0 : index
    %c0_4 = arith.constant 0 : index
    %3 = vector.load %arg3[%c0_3, %c0_4] : memref<1x128xf32, #tpu.memory_space<vmem>>, vector<1x128xf32>
    %4 = vector.broadcast %3 : vector<1x128xf32> to vector<8x128xf32>
    %5 = arith.addf %2, %4 : vector<8x128xf32>
    %6 = math.tanh %5 : vector<8x128xf32>
    %c0_5 = arith.constant 0 : index
    %c0_6 = arith.constant 0 : index
    %7 = vector.load %arg4[%c0_5, %c0_6] : memref<128x128xf32, #tpu.memory_space<vmem>>, vector<128x128xf32>
    %cst_7 = arith.constant dense<0.000000e+00> : vector<8x128xf32>
    %8 = tpu.matmul %6, %7, %cst_7 {dimension_numbers = #tpu.dot_dimension_numbers<[1], [0], [0], [1], [0, 0, 1, 1], [], []>} : vector<8x128xf32>, vector<128x128xf32>, vector<8x128xf32> -> vector<8x128xf32>
    %c0_8 = arith.constant 0 : index
    %c0_9 = arith.constant 0 : index
    %9 = vector.load %arg5[%c0_8, %c0_9] : memref<1x128xf32, #tpu.memory_space<vmem>>, vector<1x128xf32>
    %10 = vector.broadcast %9 : vector<1x128xf32> to vector<8x128xf32>
    %11 = arith.addf %8, %10 : vector<8x128xf32>
    %c0_10 = arith.constant 0 : index
    %c0_11 = arith.constant 0 : index
    %12 = vector.load %arg6[%c0_10, %c0_11] : memref<8x128xf32, #tpu.memory_space<vmem>>, vector<8x128xf32>
    tpu.vector_store %arg6[%c0_10, %c0_11], %11 {strides = array<i32>} : memref<8x128xf32, #tpu.memory_space<vmem>>, vector<8x128xf32>,
    return
  }
  func.func @transform_0(%arg0: i32) -> (i32, i32) {
    %c0_i32 = arith.constant 0 : i32
    %c0_i32_0 = arith.constant 0 : i32
    return %arg0, %c0_i32 : i32, i32
  }
  func.func @transform_1(%arg0: i32) -> (i32, i32) {
    %c0_i32 = arith.constant 0 : i32
    %c0_i32_0 = arith.constant 0 : i32
    %c0_i32_1 = arith.constant 0 : i32
    return %c0_i32, %c0_i32_0 : i32, i32
  }
  func.func @transform_2(%arg0: i32) -> (i32, i32) {
    %c0_i32 = arith.constant 0 : i32
    %c0_i32_0 = arith.constant 0 : i32
    %c0_i32_1 = arith.constant 0 : i32
    return %c0_i32, %c0_i32_0 : i32, i32
  }
  func.func @transform_3(%arg0: i32) -> (i32, i32) {
    %c0_i32 = arith.constant 0 : i32
    %c0_i32_0 = arith.constant 0 : i32
    %c0_i32_1 = arith.constant 0 : i32
    return %c0_i32, %c0_i32_0 : i32, i32
  }
  func.func @transform_4(%arg0: i32) -> (i32, i32) {
    %c0_i32 = arith.constant 0 : i32
    %c0_i32_0 = arith.constant 0 : i32
    %c0_i32_1 = arith.constant 0 : i32
    return %c0_i32, %c0_i32_0 : i32, i32
  }
  func.func @transform_5(%arg0: i32) -> (i32, i32) {
    %c0_i32 = arith.constant 0 : i32
    %c0_i32_0 = arith.constant 0 : i32
    return %arg0, %c0_i32 : i32, i32
  }
}

module attributes {stable_mosaic.version = 11 : i64} {
  func.func @_cls_head_kernel(%arg0: i32, %arg1: memref<8x128xf32, #tpu.memory_space<vmem>>, %arg2: memref<128x128xf32, #tpu.memory_space<vmem>>, %arg3: memref<1x128xf32, #tpu.memory_space<vmem>>, %arg4: memref<128x128xf32, #tpu.memory_space<vmem>>, %arg5: memref<1x128xf32, #tpu.memory_space<vmem>>, %arg6: memref<8x128xf32, #tpu.memory_space<vmem>>) attributes {dimension_semantics = [#tpu.dimension_semantics<parallel>], iteration_bounds = array<i64: 1>, scalar_prefetch = 0 : i64, scratch_operands = 0 : i64, tpu.core_type = #tpu.core_type<tc>, window_params = [{transform_indices = @transform_0, window_bounds = array<i64: 8, 128>}, {pipeline_mode = #tpu.pipeline_mode<synchronous>, transform_indices = @transform_1, window_bounds = array<i64: 128, 128>}, {pipeline_mode = #tpu.pipeline_mode<synchronous>, transform_indices = @transform_2, window_bounds = array<i64: 1, 128>}, {pipeline_mode = #tpu.pipeline_mode<synchronous>, transform_indices = @transform_3, window_bounds = array<i64: 128, 128>}, {pipeline_mode = #tpu.pipeline_mode<synchronous>, transform_indices = @transform_4, window_bounds = array<i64: 1, 128>}, {transform_indices = @transform_5, window_bounds = array<i64: 8, 128>}]} {
    %c0 = arith.constant 0 : index
    %c0_0 = arith.constant 0 : index
    %0 = vector.load %arg1[%c0, %c0_0] : memref<8x128xf32, #tpu.memory_space<vmem>>, vector<8x128xf32>
    %c0_1 = arith.constant 0 : index
    %c0_2 = arith.constant 0 : index
    %1 = vector.load %arg2[%c0_1, %c0_2] : memref<128x128xf32, #tpu.memory_space<vmem>>, vector<128x128xf32>
    %cst = arith.constant dense<0.000000e+00> : vector<8x128xf32>
    %2 = tpu.matmul %0, %1, %cst {dimension_numbers = #tpu.dot_dimension_numbers<[1], [0], [0], [1], [0, 0, 1, 1], [], []>} : vector<8x128xf32>, vector<128x128xf32>, vector<8x128xf32> -> vector<8x128xf32>
    %c0_3 = arith.constant 0 : index
    %c0_4 = arith.constant 0 : index
    %3 = vector.load %arg3[%c0_3, %c0_4] : memref<1x128xf32, #tpu.memory_space<vmem>>, vector<1x128xf32>
    %4 = vector.broadcast %3 : vector<1x128xf32> to vector<8x128xf32>
    %5 = arith.addf %2, %4 : vector<8x128xf32>
    %6 = math.tanh %5 : vector<8x128xf32>
    %c0_5 = arith.constant 0 : index
    %c0_6 = arith.constant 0 : index
    %7 = vector.load %arg4[%c0_5, %c0_6] : memref<128x128xf32, #tpu.memory_space<vmem>>, vector<128x128xf32>
    %cst_7 = arith.constant dense<0.000000e+00> : vector<8x128xf32>
    %8 = tpu.matmul %6, %7, %cst_7 {dimension_numbers = #tpu.dot_dimension_numbers<[1], [0], [0], [1], [0, 0, 1, 1], [], []>} : vector<8x128xf32>, vector<128x128xf32>, vector<8x128xf32> -> vector<8x128xf32>
    %c0_8 = arith.constant 0 : index
    %c0_9 = arith.constant 0 : index
    %9 = vector.load %arg5[%c0_8, %c0_9] : memref<1x128xf32, #tpu.memory_space<vmem>>, vector<1x128xf32>
    %10 = vector.broadcast %9 : vector<1x128xf32> to vector<8x128xf32>
    %11 = arith.addf %8, %10 : vector<8x128xf32>
    %c0_10 = arith.constant 0 : index
    %c0_11 = arith.constant 0 : index
    %12 = vector.load %arg6[%c0_10, %c0_11] : memref<8x128xf32, #tpu.memory_space<vmem>>, vector<8x128xf32>
    tpu.vector_store %arg6[%c0_10, %c0_11], %11 {strides = array<i32>} : memref<8x128xf32, #tpu.memory_space<vmem>>, vector<8x128xf32>,
    return
  }
  func.func @transform_0(%arg0: i32) -> (i32, i32) {
    %c0_i32 = arith.constant 0 : i32
    %c0_i32_0 = arith.constant 0 : i32
    return %arg0, %c0_i32 : i32, i32
  }
  func.func @transform_1(%arg0: i32) -> (i32, i32) {
    %c0_i32 = arith.constant 0 : i32
    %c0_i32_0 = arith.constant 0 : i32
    %c0_i32_1 = arith.constant 0 : i32
    return %c0_i32, %c0_i32_0 : i32, i32
  }
  func.func @transform_2(%arg0: i32) -> (i32, i32) {
    %c0_i32 = arith.constant 0 : i32
    %c0_i32_0 = arith.constant 0 : i32
    %c0_i32_1 = arith.constant 0 : i32
    return %c0_i32, %c0_i32_0 : i32, i32
  }
  func.func @transform_3(%arg0: i32) -> (i32, i32) {
    %c0_i32 = arith.constant 0 : i32
    %c0_i32_0 = arith.constant 0 : i32
    %c0_i32_1 = arith.constant 0 : i32
    return %c0_i32, %c0_i32_0 : i32, i32
  }
  func.func @transform_4(%arg0: i32) -> (i32, i32) {
    %c0_i32 = arith.constant 0 : i32
    %c0_i32_0 = arith.constant 0 : i32
    %c0_i32_1 = arith.constant 0 : i32
    return %c0_i32, %c0_i32_0 : i32, i32
  }
  func.func @transform_5(%arg0: i32) -> (i32, i32) {
    %c0_i32 = arith.constant 0 : i32
    %c0_i32_0 = arith.constant 0 : i32
    return %arg0, %c0_i32 : i32, i32
  }
}

</mosaic_0001>

<bundles_post_ra>
// kernel: tpu_custom_call.1
= control target key start
LH: loop header
LB: loop body
LE: loop exit
PB: predicated region body
PF: predicated region fallthrough
CT: control target
= control target key end

     0   :  { %10 = vsyncpa [#allocation3], 0  ;;  %s578_s0 = inlined_call_operand.hbm [shape: f32[2,1024], index: 0, kind: input, shape index: {}]   ;;  %s579_s1 = inlined_call_operand.hbm [shape: f32[128,128], index: 1, kind: input, shape index: {}]   ;;  %s580_s2 = inlined_call_operand.vmem [shape: f32[1,128], index: 2, kind: input, shape index: {}]   ;;  %s581_s3 = inlined_call_operand.hbm [shape: f32[128,128], index: 3, kind: input, shape index: {}]   ;;  %s582_s4 = inlined_call_operand.vmem [shape: f32[1,128], index: 4, kind: input, shape index: {}]   ;;  %s583_s5 = inlined_call_operand.hbm [shape: f32[2,128], index: 5, kind: output, shape index: {}]  }
   0x1   :  { %11 = vsyncpa [#allocation6], 0 }
   0x2   :  { %12 = vsyncpa [#allocation4], 0 }
   0x3   :  { %17 = vsyncadd [#allocation3], 96  ;;  %s474_s18 = smov [#allocation5]  }
   0x4   :  { %s30_s19 = sshll.u32 %s474_s18, 4  ;;  %s31_s19 = int_to_ptr.vmem [resolvable:$true] %s30_s19 }
   0x5   :  { %s396_s20 = scalar_lea.vmem %s31_s19, 2048  ;;  %p401_p1 = scmp.lt.s32.totalorder %s31_s19, %s31_s19 }
   0x6   :  { %p397_p0 = scmp.ne.s32.totalorder %s31_s19, %s396_s20  ;;  %p402_p2 = scmp.lt.s32.totalorder %s396_s20, %s396_s20 }
   0x8   :  { %p403_p3 = por %p402_p2, %p401_p1 }
   0xa   :  { %p404_p4 = pnand %p403_p3, %p397_p0 }
   0xc   :  { %407 = shalt.err (!%p404_p4)
}
   0xd   :  { %s475_s21 = smov 128   ;;  %s476_s22 = smov 8  }
   0xe   :  { %36 = dma.hbm_to_vmem [thread:$0]  %s579_s1, 2048, %s31_s19, [#allocation6], %s475_s21, %s475_s21, %s476_s22  }
   0xf   :  { %s477_s25 = smov [#allocation2]  }
  0x10   :  { %s18_s26 = sshll.u32 %s477_s25, 4  ;;  %s19_s26 = int_to_ptr.vmem [resolvable:$true] %s18_s26 }
  0x11   :  { %s416_s27 = scalar_lea.vmem %s19_s26, 32  ;;  %s420_s28 = scalar_lea.vmem %s19_s26, 128 }
  0x12   :  { %p417_p5 = scmp.ne.s32.totalorder %s19_s26, %s416_s27  ;;  %p421_p6 = scmp.lt.s32.totalorder %s19_s26, %s19_s26 }
  0x13   :  { %p422_p7 = scmp.lt.s32.totalorder %s420_s28, %s416_s27 }
  0x15   :  { %p423_p8 = por %p422_p7, %p421_p6 }
  0x17   :  { %p424_p9 = pnand %p423_p8, %p417_p5 }
  0x19   :  { %427 = shalt.err (!%p424_p9)
}
  0x1a   :  { %s478_s29 = smov 256   ;;  %s479_s30 = smov 32  }
  0x1b   :  { %s480_s6 = smov 2   ;;  %s481_s1 = smov [#allocation7]  }
  0x1c   :  { %24 = dma.hbm_to_vmem [thread:$0]  %s578_s0, 32, %s19_s26, [#allocation3], %s478_s29, %s479_s30, %s480_s6  }
  0x1d   :  { %s44_s9 = sshll.u32 %s481_s1, 4  ;;  %s45_s9 = int_to_ptr.vmem [resolvable:$true] %s44_s9 }
  0x1e   :  { %s436_s10 = scalar_lea.vmem %s45_s9, 2048  ;;  %p441_p11 = scmp.lt.s32.totalorder %s45_s9, %s45_s9 }
  0x1f   :  { %p437_p10 = scmp.ne.s32.totalorder %s45_s9, %s436_s10  ;;  %p442_p12 = scmp.lt.s32.totalorder %s436_s10, %s436_s10 }
  0x21   :  { %p443_p13 = por %p442_p12, %p441_p11 }
  0x23   :  { %p444_p0 = pnand %p443_p13, %p437_p10 }
  0x25   :  { %447 = shalt.err (!%p444_p0)
}
  0x26   :  { %50 = dma.hbm_to_vmem [thread:$0]  %s581_s3, 2048, %s45_s9, [#allocation6], %s475_s21, %s475_s21, %s476_s22  }
  0x27   :  { %468 = dma.done.wait [#allocation3], 128  }
  0x28   :  { %469 = vsyncadd [#allocation3], 4294967168 }
  0x29   :  { %470 = dma.done.wait [#allocation6], 4096  }
  0x2a   :  { %471 = vsyncadd [#allocation6], 4294963200  ;;  %v482_v0 = vmov 0.0   ;;  %vm483_vm0 = vmmov 0   ;;  %v78_v1 = vld [vmem:[#allocation5 + $0x78] sm:$0xff]  ;;  %v77_v2 = vld [vmem:[#allocation5 + $0x70] sm:$0xff] }
  0x2b   :  { %305 = vmatprep.subr.mxu0 %v482_v0  ;;  %337 = vmatprep.mubr.msk.f32.mxu0 %vm483_vm0, %v482_v0  ;;  %v76_v3 = vld [vmem:[#allocation5 + $0x68] sm:$0xff]  ;;  %v75_v4 = vld [vmem:[#allocation5 + $0x60] sm:$0xff]  ;;  %v172_v5 = vld [vmem:[#allocation7 + $0x78] sm:$0xff] }
  0x2c   :  { %340 = vmatprep.subr.mxu1 %v482_v0  ;;  %372 = vmatprep.mubr.msk.f32.mxu1 %vm483_vm0, %v482_v0  ;;  %v74_v6 = vld [vmem:[#allocation5 + $0x58] sm:$0xff]  ;;  %v171_v7 = vld [vmem:[#allocation7 + $0x70] sm:$0xff]  ;;  %v170_v8 = vld [vmem:[#allocation7 + $0x68] sm:$0xff] }
  0x2d   :  { %306 = vmatpush3.msra.mxu0 %v78_v1  ;;  %341 = vmatpush3.msra.mxu1 %v172_v5  ;;  %v73_v9 = vld [vmem:[#allocation5 + $0x50] sm:$0xff]  ;;  %v169_v10 = vld [vmem:[#allocation7 + $0x60] sm:$0xff]  ;;  %v72_v11 = vld [vmem:[#allocation5 + $0x48] sm:$0xff] }
  0x2e   :  { %307 = vmatprep.subr.mxu0 %v482_v0  ;;  %342 = vmatprep.subr.mxu1 %v482_v0  ;;  %v168_v12 = vld [vmem:[#allocation7 + $0x58] sm:$0xff]  ;;  %v71_v13 = vld [vmem:[#allocation5 + $0x40] sm:$0xff]  ;;  %v167_v14 = vld [vmem:[#allocation7 + $0x50] sm:$0xff] }
  0x2f   :  { %308 = vmatpush3.msra.mxu0 %v77_v2  ;;  %343 = vmatpush3.msra.mxu1 %v171_v7  ;;  %v70_v15 = vld [vmem:[#allocation5 + $0x38] sm:$0xff]  ;;  %v166_v16 = vld [vmem:[#allocation7 + $0x48] sm:$0xff]  ;;  %v69_v17 = vld [vmem:[#allocation5 + $0x30] sm:$0xff] }
  0x30   :  { %309 = vmatprep.subr.mxu0 %v482_v0  ;;  %344 = vmatprep.subr.mxu1 %v482_v0  ;;  %v68_v18 = vld [vmem:[#allocation5 + $0x28] sm:$0xff]  ;;  %v67_v19 = vld [vmem:[#allocation5 + $0x20] sm:$0xff]  ;;  %v66_v20 = vld [vmem:[#allocation5 + $0x18] sm:$0xff] }
  0x31   :  { %310 = vmatpush3.msra.mxu0 %v76_v3  ;;  %345 = vmatpush3.msra.mxu1 %v170_v8  ;;  %v65_v21 = vld [vmem:[#allocation5 + $0x10] sm:$0xff]  ;;  %v64_v22 = vld [vmem:[#allocation5 + $0x8] sm:$0xff]  ;;  %v63_v23 = vld [vmem:[#allocation5] sm:$0xff] }
  0x32   :  { %311 = vmatprep.subr.mxu0 %v482_v0  ;;  %346 = vmatprep.subr.mxu1 %v482_v0  ;;  %v62_v24 = vld [vmem:[#allocation2] sm:$0xff]  ;;  %v165_v25 = vld [vmem:[#allocation7 + $0x40] sm:$0xff]  ;;  %v163_v27 = vld [vmem:[#allocation7 + $0x30] sm:$0xff] }
  0x33   :  { %312 = vmatpush3.msra.mxu0 %v75_v4  ;;  %347 = vmatpush3.msra.mxu1 %v169_v10  ;;  %v164_v26 = vld [vmem:[#allocation7 + $0x38] sm:$0xff]  ;;  %v162_v28 = vld [vmem:[#allocation7 + $0x28] sm:$0xff]  ;;  %v161_v29 = vld [vmem:[#allocation7 + $0x20] sm:$0xff] }
  0x34   :  { %313 = vmatprep.subr.mxu0 %v482_v0  ;;  %348 = vmatprep.subr.mxu1 %v482_v0  ;;  %v160_v30 = vld [vmem:[#allocation7 + $0x18] sm:$0xff]  ;;  %v159_v31 = vld [vmem:[#allocation7 + $0x10] sm:$0xff]  ;;  %v158_v32 = vld [vmem:[#allocation7 + $0x8] sm:$0xff] }
  0x35   :  { %314 = vmatpush3.msra.mxu0 %v74_v6  ;;  %349 = vmatpush3.msra.mxu1 %v168_v12  ;;  %v157_v33 = vld [vmem:[#allocation7] sm:$0xff]  ;;  %v269_v34 = vld [vmem:[%s580_s2] ss:$0 sm:$0xff] }
  0x36   :  { %315 = vmatprep.subr.mxu0 %v482_v0  ;;  %350 = vmatprep.subr.mxu1 %v482_v0  ;;  %v270_v39 = vld [vmem:[%s582_s4] ss:$0 sm:$0xff] }
  0x37   :  { %316 = vmatpush3.msra.mxu0 %v73_v9  ;;  %351 = vmatpush3.msra.mxu1 %v167_v14 }
  0x38   :  { %317 = vmatprep.subr.mxu0 %v482_v0  ;;  %352 = vmatprep.subr.mxu1 %v482_v0 }
  0x39   :  { %318 = vmatpush3.msra.mxu0 %v72_v11  ;;  %353 = vmatpush3.msra.mxu1 %v166_v16 }
  0x3a   :  { %319 = vmatprep.subr.mxu0 %v482_v0  ;;  %354 = vmatprep.subr.mxu1 %v482_v0 }
  0x3b   :  { %320 = vmatpush3.msra.mxu0 %v71_v13  ;;  %355 = vmatpush3.msra.mxu1 %v165_v25 }
  0x3c   :  { %321 = vmatprep.subr.mxu0 %v482_v0  ;;  %356 = vmatprep.subr.mxu1 %v482_v0 }
  0x3d   :  { %322 = vmatpush3.msra.mxu0 %v70_v15  ;;  %357 = vmatpush3.msra.mxu1 %v164_v26 }
  0x3e   :  { %323 = vmatprep.subr.mxu0 %v482_v0  ;;  %358 = vmatprep.subr.mxu1 %v482_v0 }
  0x3f   :  { %324 = vmatpush3.msra.mxu0 %v69_v17  ;;  %359 = vmatpush3.msra.mxu1 %v163_v27 }
  0x40   :  { %325 = vmatprep.subr.mxu0 %v482_v0  ;;  %360 = vmatprep.subr.mxu1 %v482_v0 }
  0x41   :  { %326 = vmatpush3.msra.mxu0 %v68_v18  ;;  %361 = vmatpush3.msra.mxu1 %v162_v28 }
  0x42   :  { %327 = vmatprep.subr.mxu0 %v482_v0  ;;  %362 = vmatprep.subr.mxu1 %v482_v0 }
  0x43   :  { %328 = vmatpush3.msra.mxu0 %v67_v19  ;;  %363 = vmatpush3.msra.mxu1 %v161_v29 }
  0x44   :  { %329 = vmatprep.subr.mxu0 %v482_v0  ;;  %364 = vmatprep.subr.mxu1 %v482_v0 }
  0x45   :  { %330 = vmatpush3.msra.mxu0 %v66_v20  ;;  %365 = vmatpush3.msra.mxu1 %v160_v30 }
  0x46   :  { %331 = vmatprep.subr.mxu0 %v482_v0  ;;  %366 = vmatprep.subr.mxu1 %v482_v0 }
  0x47   :  { %332 = vmatpush3.msra.mxu0 %v65_v21  ;;  %367 = vmatpush3.msra.mxu1 %v159_v31 }
  0x48   :  { %333 = vmatprep.subr.mxu0 %v482_v0  ;;  %368 = vmatprep.subr.mxu1 %v482_v0 }
  0x49   :  { %334 = vmatpush3.msra.mxu0 %v64_v22  ;;  %369 = vmatpush3.msra.mxu1 %v158_v32 }
  0x4a   :  { %335 = vmatprep.subr.mxu0 %v482_v0  ;;  %370 = vmatprep.subr.mxu1 %v482_v0 }
  0x4b   :  { %336 = vmatpush3.msra.mxu0 %v63_v23  ;;  %371 = vmatpush3.msra.mxu1 %v157_v33 }
  0x4c   :  { %338 = vmatmul.mubr.f32.vlgmr.msra.gmra.mxu0 %v62_v24 }
 0x10c   :  { %v152_v35 = vpop.f32.mrf.mxu0 }
 0x10d   :  { %v153_v36 = vadd.f32 %v269_v34, %v152_v35 }
 0x10e   :  { %v339_v37 = vpop.f32.mrf.mxu0 }
 0x10f   :  { %386 = vtanh.f32 %v153_v36 }
 0x11c   :  { %v387_v38 = vpop.eup %386 }
 0x11d   :  { %373 = vmatmul.mubr.f32.vlgmr.msra.gmra.mxu1 %v387_v38 }
 0x1dd   :  { %v246_v40 = vpop.f32.mrf.mxu1 }
 0x1de   :  { %v247_v41 = vadd.f32 %v270_v39, %v246_v40 }
 0x1df   :  { %v374_v42 = vpop.f32.mrf.mxu1 }
 0x1e0   :  { %250 = vst [vmem:[#allocation8] sm:$0xff] %v247_v41 }
 0x1e1   :  { %255 = vsyncadd [#allocation4], 96  ;;  %s484_s15 = smov [#allocation8]  }
 0x1e2   :  { %s256_s16 = sshll.u32 %s484_s15, 4  ;;  %s257_s16 = int_to_ptr.vmem [resolvable:$true] %s256_s16 }
 0x1e3   :  { %s448_s17 = scalar_lea.vmem %s257_s16, 32  ;;  %s452_s2 = scalar_lea.vmem %s257_s16, 128 }
 0x1e4   :  { %p449_p1 = scmp.ne.s32.totalorder %s257_s16, %s448_s17  ;;  %p453_p2 = scmp.lt.s32.totalorder %s257_s16, %s257_s16 }
 0x1e5   :  { %p454_p3 = scmp.lt.s32.totalorder %s452_s2, %s448_s17 }
 0x1e7   :  { %p455_p4 = por %p454_p3, %p453_p2 }
 0x1e9   :  { %p456_p5 = pnand %p455_p4, %p449_p1 }
 0x1eb   :  { %459 = shalt.err (!%p456_p5)
}
 0x1ec   :  { %262 = dma.vmem_to_hbm [thread:$0]  %s257_s16, 32, %s583_s5, [#allocation4], %s479_s30, %s479_s30, %s480_s6  }
 0x1ed   :  { %472 = dma.done.wait [#allocation4], 128  }
 0x1ee   :  { %473 = vsyncadd [#allocation4], 4294967168 }
 0x1ef   :  { %266 = vsyncpa [#allocation3], 1 }
 0x1f0   :  { %267 = vsyncpa [#allocation6], 1 }
 0x1f1   :  { %268 = vsyncpa [#allocation4], 1 }

// kernel: tpu_custom_call.1
= control target key start
LH: loop header
LB: loop body
LE: loop exit
PB: predicated region body
PF: predicated region fallthrough
CT: control target
= control target key end

     0   :  { %10 = vsyncpa [#allocation3], 0  ;;  %s578_s0 = inlined_call_operand.hbm [shape: f32[2,1024], index: 0, kind: input, shape index: {}]   ;;  %s579_s1 = inlined_call_operand.hbm [shape: f32[128,128], index: 1, kind: input, shape index: {}]   ;;  %s580_s2 = inlined_call_operand.vmem [shape: f32[1,128], index: 2, kind: input, shape index: {}]   ;;  %s581_s3 = inlined_call_operand.hbm [shape: f32[128,128], index: 3, kind: input, shape index: {}]   ;;  %s582_s4 = inlined_call_operand.vmem [shape: f32[1,128], index: 4, kind: input, shape index: {}]   ;;  %s583_s5 = inlined_call_operand.hbm [shape: f32[2,128], index: 5, kind: output, shape index: {}]  }
   0x1   :  { %11 = vsyncpa [#allocation6], 0 }
   0x2   :  { %12 = vsyncpa [#allocation4], 0 }
   0x3   :  { %17 = vsyncadd [#allocation3], 96  ;;  %s474_s18 = smov [#allocation5]  }
   0x4   :  { %s30_s19 = sshll.u32 %s474_s18, 4  ;;  %s31_s19 = int_to_ptr.vmem [resolvable:$true] %s30_s19 }
   0x5   :  { %s396_s20 = scalar_lea.vmem %s31_s19, 2048  ;;  %p401_p1 = scmp.lt.s32.totalorder %s31_s19, %s31_s19 }
   0x6   :  { %p397_p0 = scmp.ne.s32.totalorder %s31_s19, %s396_s20  ;;  %p402_p2 = scmp.lt.s32.totalorder %s396_s20, %s396_s20 }
   0x8   :  { %p403_p3 = por %p402_p2, %p401_p1 }
   0xa   :  { %p404_p4 = pnand %p403_p3, %p397_p0 }
   0xc   :  { %407 = shalt.err (!%p404_p4)
}
   0xd   :  { %s475_s21 = smov 128   ;;  %s476_s22 = smov 8  }
   0xe   :  { %36 = dma.hbm_to_vmem [thread:$0]  %s579_s1, 2048, %s31_s19, [#allocation6], %s475_s21, %s475_s21, %s476_s22  }
   0xf   :  { %s477_s25 = smov [#allocation2]  }
  0x10   :  { %s18_s26 = sshll.u32 %s477_s25, 4  ;;  %s19_s26 = int_to_ptr.vmem [resolvable:$true] %s18_s26 }
  0x11   :  { %s416_s27 = scalar_lea.vmem %s19_s26, 32  ;;  %s420_s28 = scalar_lea.vmem %s19_s26, 128 }
  0x12   :  { %p417_p5 = scmp.ne.s32.totalorder %s19_s26, %s416_s27  ;;  %p421_p6 = scmp.lt.s32.totalorder %s19_s26, %s19_s26 }
  0x13   :  { %p422_p7 = scmp.lt.s32.totalorder %s420_s28, %s416_s27 }
  0x15   :  { %p423_p8 = por %p422_p7, %p421_p6 }
  0x17   :  { %p424_p9 = pnand %p423_p8, %p417_p5 }
  0x19   :  { %427 = shalt.err (!%p424_p9)
}
  0x1a   :  { %s478_s29 = smov 256   ;;  %s479_s30 = smov 32  }
  0x1b   :  { %s480_s6 = smov 2   ;;  %s481_s1 = smov [#allocation7]  }
  0x1c   :  { %24 = dma.hbm_to_vmem [thread:$0]  %s578_s0, 32, %s19_s26, [#allocation3], %s478_s29, %s479_s30, %s480_s6  }
  0x1d   :  { %s44_s9 = sshll.u32 %s481_s1, 4  ;;  %s45_s9 = int_to_ptr.vmem [resolvable:$true] %s44_s9 }
  0x1e   :  { %s436_s10 = scalar_lea.vmem %s45_s9, 2048  ;;  %p441_p11 = scmp.lt.s32.totalorder %s45_s9, %s45_s9 }
  0x1f   :  { %p437_p10 = scmp.ne.s32.totalorder %s45_s9, %s436_s10  ;;  %p442_p12 = scmp.lt.s32.totalorder %s436_s10, %s436_s10 }
  0x21   :  { %p443_p13 = por %p442_p12, %p441_p11 }
  0x23   :  { %p444_p0 = pnand %p443_p13, %p437_p10 }
  0x25   :  { %447 = shalt.err (!%p444_p0)
}
  0x26   :  { %50 = dma.hbm_to_vmem [thread:$0]  %s581_s3, 2048, %s45_s9, [#allocation6], %s475_s21, %s475_s21, %s476_s22  }
  0x27   :  { %468 = dma.done.wait [#allocation3], 128  }
  0x28   :  { %469 = vsyncadd [#allocation3], 4294967168 }
  0x29   :  { %470 = dma.done.wait [#allocation6], 4096  }
  0x2a   :  { %471 = vsyncadd [#allocation6], 4294963200  ;;  %v482_v0 = vmov 0.0   ;;  %vm483_vm0 = vmmov 0   ;;  %v78_v1 = vld [vmem:[#allocation5 + $0x78] sm:$0xff]  ;;  %v77_v2 = vld [vmem:[#allocation5 + $0x70] sm:$0xff] }
  0x2b   :  { %305 = vmatprep.subr.mxu0 %v482_v0  ;;  %337 = vmatprep.mubr.msk.f32.mxu0 %vm483_vm0, %v482_v0  ;;  %v76_v3 = vld [vmem:[#allocation5 + $0x68] sm:$0xff]  ;;  %v75_v4 = vld [vmem:[#allocation5 + $0x60] sm:$0xff]  ;;  %v172_v5 = vld [vmem:[#allocation7 + $0x78] sm:$0xff] }
  0x2c   :  { %340 = vmatprep.subr.mxu1 %v482_v0  ;;  %372 = vmatprep.mubr.msk.f32.mxu1 %vm483_vm0, %v482_v0  ;;  %v74_v6 = vld [vmem:[#allocation5 + $0x58] sm:$0xff]  ;;  %v171_v7 = vld [vmem:[#allocation7 + $0x70] sm:$0xff]  ;;  %v170_v8 = vld [vmem:[#allocation7 + $0x68] sm:$0xff] }
  0x2d   :  { %306 = vmatpush3.msra.mxu0 %v78_v1  ;;  %341 = vmatpush3.msra.mxu1 %v172_v5  ;;  %v73_v9 = vld [vmem:[#allocation5 + $0x50] sm:$0xff]  ;;  %v169_v10 = vld [vmem:[#allocation7 + $0x60] sm:$0xff]  ;;  %v72_v11 = vld [vmem:[#allocation5 + $0x48] sm:$0xff] }
  0x2e   :  { %307 = vmatprep.subr.mxu0 %v482_v0  ;;  %342 = vmatprep.subr.mxu1 %v482_v0  ;;  %v168_v12 = vld [vmem:[#allocation7 + $0x58] sm:$0xff]  ;;  %v71_v13 = vld [vmem:[#allocation5 + $0x40] sm:$0xff]  ;;  %v167_v14 = vld [vmem:[#allocation7 + $0x50] sm:$0xff] }
  0x2f   :  { %308 = vmatpush3.msra.mxu0 %v77_v2  ;;  %343 = vmatpush3.msra.mxu1 %v171_v7  ;;  %v70_v15 = vld [vmem:[#allocation5 + $0x38] sm:$0xff]  ;;  %v166_v16 = vld [vmem:[#allocation7 + $0x48] sm:$0xff]  ;;  %v69_v17 = vld [vmem:[#allocation5 + $0x30] sm:$0xff] }
  0x30   :  { %309 = vmatprep.subr.mxu0 %v482_v0  ;;  %344 = vmatprep.subr.mxu1 %v482_v0  ;;  %v68_v18 = vld [vmem:[#allocation5 + $0x28] sm:$0xff]  ;;  %v67_v19 = vld [vmem:[#allocation5 + $0x20] sm:$0xff]  ;;  %v66_v20 = vld [vmem:[#allocation5 + $0x18] sm:$0xff] }
  0x31   :  { %310 = vmatpush3.msra.mxu0 %v76_v3  ;;  %345 = vmatpush3.msra.mxu1 %v170_v8  ;;  %v65_v21 = vld [vmem:[#allocation5 + $0x10] sm:$0xff]  ;;  %v64_v22 = vld [vmem:[#allocation5 + $0x8] sm:$0xff]  ;;  %v63_v23 = vld [vmem:[#allocation5] sm:$0xff] }
  0x32   :  { %311 = vmatprep.subr.mxu0 %v482_v0  ;;  %346 = vmatprep.subr.mxu1 %v482_v0  ;;  %v62_v24 = vld [vmem:[#allocation2] sm:$0xff]  ;;  %v165_v25 = vld [vmem:[#allocation7 + $0x40] sm:$0xff]  ;;  %v163_v27 = vld [vmem:[#allocation7 + $0x30] sm:$0xff] }
  0x33   :  { %312 = vmatpush3.msra.mxu0 %v75_v4  ;;  %347 = vmatpush3.msra.mxu1 %v169_v10  ;;  %v164_v26 = vld [vmem:[#allocation7 + $0x38] sm:$0xff]  ;;  %v162_v28 = vld [vmem:[#allocation7 + $0x28] sm:$0xff]  ;;  %v161_v29 = vld [vmem:[#allocation7 + $0x20] sm:$0xff] }
  0x34   :  { %313 = vmatprep.subr.mxu0 %v482_v0  ;;  %348 = vmatprep.subr.mxu1 %v482_v0  ;;  %v160_v30 = vld [vmem:[#allocation7 + $0x18] sm:$0xff]  ;;  %v159_v31 = vld [vmem:[#allocation7 + $0x10] sm:$0xff]  ;;  %v158_v32 = vld [vmem:[#allocation7 + $0x8] sm:$0xff] }
  0x35   :  { %314 = vmatpush3.msra.mxu0 %v74_v6  ;;  %349 = vmatpush3.msra.mxu1 %v168_v12  ;;  %v157_v33 = vld [vmem:[#allocation7] sm:$0xff]  ;;  %v269_v34 = vld [vmem:[%s580_s2] ss:$0 sm:$0xff] }
  0x36   :  { %315 = vmatprep.subr.mxu0 %v482_v0  ;;  %350 = vmatprep.subr.mxu1 %v482_v0  ;;  %v270_v39 = vld [vmem:[%s582_s4] ss:$0 sm:$0xff] }
  0x37   :  { %316 = vmatpush3.msra.mxu0 %v73_v9  ;;  %351 = vmatpush3.msra.mxu1 %v167_v14 }
  0x38   :  { %317 = vmatprep.subr.mxu0 %v482_v0  ;;  %352 = vmatprep.subr.mxu1 %v482_v0 }
  0x39   :  { %318 = vmatpush3.msra.mxu0 %v72_v11  ;;  %353 = vmatpush3.msra.mxu1 %v166_v16 }
  0x3a   :  { %319 = vmatprep.subr.mxu0 %v482_v0  ;;  %354 = vmatprep.subr.mxu1 %v482_v0 }
  0x3b   :  { %320 = vmatpush3.msra.mxu0 %v71_v13  ;;  %355 = vmatpush3.msra.mxu1 %v165_v25 }
  0x3c   :  { %321 = vmatprep.subr.mxu0 %v482_v0  ;;  %356 = vmatprep.subr.mxu1 %v482_v0 }
  0x3d   :  { %322 = vmatpush3.msra.mxu0 %v70_v15  ;;  %357 = vmatpush3.msra.mxu1 %v164_v26 }
  0x3e   :  { %323 = vmatprep.subr.mxu0 %v482_v0  ;;  %358 = vmatprep.subr.mxu1 %v482_v0 }
  0x3f   :  { %324 = vmatpush3.msra.mxu0 %v69_v17  ;;  %359 = vmatpush3.msra.mxu1 %v163_v27 }
  0x40   :  { %325 = vmatprep.subr.mxu0 %v482_v0  ;;  %360 = vmatprep.subr.mxu1 %v482_v0 }
  0x41   :  { %326 = vmatpush3.msra.mxu0 %v68_v18  ;;  %361 = vmatpush3.msra.mxu1 %v162_v28 }
  0x42   :  { %327 = vmatprep.subr.mxu0 %v482_v0  ;;  %362 = vmatprep.subr.mxu1 %v482_v0 }
  0x43   :  { %328 = vmatpush3.msra.mxu0 %v67_v19  ;;  %363 = vmatpush3.msra.mxu1 %v161_v29 }
  0x44   :  { %329 = vmatprep.subr.mxu0 %v482_v0  ;;  %364 = vmatprep.subr.mxu1 %v482_v0 }
  0x45   :  { %330 = vmatpush3.msra.mxu0 %v66_v20  ;;  %365 = vmatpush3.msra.mxu1 %v160_v30 }
  0x46   :  { %331 = vmatprep.subr.mxu0 %v482_v0  ;;  %366 = vmatprep.subr.mxu1 %v482_v0 }
  0x47   :  { %332 = vmatpush3.msra.mxu0 %v65_v21  ;;  %367 = vmatpush3.msra.mxu1 %v159_v31 }
  0x48   :  { %333 = vmatprep.subr.mxu0 %v482_v0  ;;  %368 = vmatprep.subr.mxu1 %v482_v0 }
  0x49   :  { %334 = vmatpush3.msra.mxu0 %v64_v22  ;;  %369 = vmatpush3.msra.mxu1 %v158_v32 }
  0x4a   :  { %335 = vmatprep.subr.mxu0 %v482_v0  ;;  %370 = vmatprep.subr.mxu1 %v482_v0 }
  0x4b   :  { %336 = vmatpush3.msra.mxu0 %v63_v23  ;;  %371 = vmatpush3.msra.mxu1 %v157_v33 }
  0x4c   :  { %338 = vmatmul.mubr.f32.vlgmr.msra.gmra.mxu0 %v62_v24 }
 0x10c   :  { %v152_v35 = vpop.f32.mrf.mxu0 }
 0x10d   :  { %v153_v36 = vadd.f32 %v269_v34, %v152_v35 }
 0x10e   :  { %v339_v37 = vpop.f32.mrf.mxu0 }
 0x10f   :  { %386 = vtanh.f32 %v153_v36 }
 0x11c   :  { %v387_v38 = vpop.eup %386 }
 0x11d   :  { %373 = vmatmul.mubr.f32.vlgmr.msra.gmra.mxu1 %v387_v38 }
 0x1dd   :  { %v246_v40 = vpop.f32.mrf.mxu1 }
 0x1de   :  { %v247_v41 = vadd.f32 %v270_v39, %v246_v40 }
 0x1df   :  { %v374_v42 = vpop.f32.mrf.mxu1 }
 0x1e0   :  { %250 = vst [vmem:[#allocation8] sm:$0xff] %v247_v41 }
 0x1e1   :  { %255 = vsyncadd [#allocation4], 96  ;;  %s484_s15 = smov [#allocation8]  }
 0x1e2   :  { %s256_s16 = sshll.u32 %s484_s15, 4  ;;  %s257_s16 = int_to_ptr.vmem [resolvable:$true] %s256_s16 }
 0x1e3   :  { %s448_s17 = scalar_lea.vmem %s257_s16, 32  ;;  %s452_s2 = scalar_lea.vmem %s257_s16, 128 }
 0x1e4   :  { %p449_p1 = scmp.ne.s32.totalorder %s257_s16, %s448_s17  ;;  %p453_p2 = scmp.lt.s32.totalorder %s257_s16, %s257_s16 }
 0x1e5   :  { %p454_p3 = scmp.lt.s32.totalorder %s452_s2, %s448_s17 }
 0x1e7   :  { %p455_p4 = por %p454_p3, %p453_p2 }
 0x1e9   :  { %p456_p5 = pnand %p455_p4, %p449_p1 }
 0x1eb   :  { %459 = shalt.err (!%p456_p5)
}
 0x1ec   :  { %262 = dma.vmem_to_hbm [thread:$0]  %s257_s16, 32, %s583_s5, [#allocation4], %s479_s30, %s479_s30, %s480_s6  }
 0x1ed   :  { %472 = dma.done.wait [#allocation4], 128  }
 0x1ee   :  { %473 = vsyncadd [#allocation4], 4294967168 }
 0x1ef   :  { %266 = vsyncpa [#allocation3], 1 }
 0x1f0   :  { %267 = vsyncpa [#allocation6], 1 }
 0x1f1   :  { %268 = vsyncpa [#allocation4], 1 }

</bundles_post_ra>
